<compile_context>
chip_gen: v6e
topology: v6e:2x2x1
jax: 0.10.0
libtpu: 0.0.40
codegen_flags: <defaults>
</compile_context>

<pallas_src>
import math

import jax
import jax.numpy as jnp
from jax.experimental import pallas as pl
from jax.experimental.pallas import tpu as pltpu


def _round_up(x, m):
    return ((x + m - 1) // m) * m


def mlp_kernel(x_ref, w1_ref, b1_ref, w2_ref, b2_ref, w3_ref, b3_ref, o_ref,
               xpad_ref):
    # Lane-pad the raw (TB, 9) f32 board tile to (TB, 16) bf16 inside the kernel
    # (cheap VPU filler under the MXU/DMA critical path) so the wrapper never
    # materializes a padded copy of x in HBM.
    xpad_ref[...] = jnp.zeros_like(xpad_ref)
    xpad_ref[:, :9] = x_ref[...].astype(jnp.bfloat16)
    x = xpad_ref[...]                                          # (TB, 16) bf16

    # fc1 + relu  (zero-padded K rows of w1 meet zero lanes of x: no-op)
    h1 = jnp.dot(x, w1_ref[...], preferred_element_type=jnp.float32) + b1_ref[...]
    h1 = jnp.maximum(h1, 0.0).astype(jnp.bfloat16)             # (TB, 128)

    # fc2 + relu  (padded N cols have zero weights/bias -> 0 after ReLU)
    h2 = jnp.dot(h1, w2_ref[...], preferred_element_type=jnp.float32) + b2_ref[...]
    h2 = jnp.maximum(h2, 0.0).astype(jnp.bfloat16)             # (TB, 128)

    # fc3 (no activation): f32 MXU accumulation, bf16 lane-dense writeback.
    o_ref[...] = (
        jnp.dot(h2, w3_ref[...], preferred_element_type=jnp.float32) + b3_ref[...]
    ).astype(jnp.bfloat16)


def tictactoe_ai_forward(x, packed_params):
    """x: (B, 9) float32 boards. packed_params: output of pack_params()."""
    w1, b1, w2, b2, w3, b3 = packed_params
    B = x.shape[0]

    # Batch tile: multiple of 16 (bf16 sublane packing). Large enough to
    # amortize per-step pipeline overhead, capped at 2048 to stay well inside
    # v5e's 16 MiB scoped-VMEM default; at large B it is ~B/2 so the "parallel"
    # batch axis has >= 2 tiles for v7x's two TensorCores.
    TB = min(2048, _round_up(max((B + 1) // 2, 1), 16))
    B_pad = _round_up(B, TB)
    grid = (B_pad // TB,)

    # Only a cheap batch-dim pad (no feature pad / cast pass over x in HBM).
    x_p = x if B_pad == B else jnp.pad(x, ((0, B_pad - B), (0, 0)))

    def pinned(arr):
        # Weights / biases: one block == whole array, VMEM-resident across the grid.
        return pl.BlockSpec(arr.shape, lambda i: (0, 0))

    out_padded = pl.pallas_call(
        mlp_kernel,
        out_shape=jax.ShapeDtypeStruct((B_pad, 128), jnp.bfloat16),
        grid=grid,
        in_specs=[
            pl.BlockSpec((TB, 9), lambda i: (i, 0)),   # raw f32 board tile
            pinned(w1), pinned(b1),
            pinned(w2), pinned(b2),
            pinned(w3), pinned(b3),
        ],
        out_specs=pl.BlockSpec((TB, 128), lambda i: (i, 0)),   # lane-dense bf16 tile
        scratch_shapes=[pltpu.VMEM((TB, 16), jnp.bfloat16)],   # lane-padded x
        compiler_params=pltpu.CompilerParams(
            dimension_semantics=("parallel",),
        ),
    )(x_p, w1, b1, w2, b2, w3, b3)

    # Slice the real logits; cast back to f32 only at the boundary (tiny vs the
    # bf16 kernel writeback). Skip/fuse this in a real consumer if bf16 is fine.
    return out_padded[:B, :9].astype(jnp.float32)


def init_params(key):
    """Raw f32 params mimicking PyTorch nn.Linear default init U(-1/sqrt(fan_in), +).

    Returned shapes (in_features, out_features) / (1, out_features):
      w1 (9,128), b1 (1,128), w2 (128,64), b2 (1,64), w3 (64,9), b3 (1,9)
    """
    dims = [(9, 128), (128, 64), (64, 9)]
    params = []
    for fan_in, fan_out in dims:
        kw, kb, key = jax.random.split(key, 3)
        bound = 1.0 / math.sqrt(fan_in)
        w = jax.random.uniform(kw, (fan_in, fan_out), jnp.float32, -bound, bound)
        b = jax.random.uniform(kb, (1, fan_out), jnp.float32, -bound, bound)
        params.extend([w, b])
    return tuple(params)


def pack_params(params):
    """Zero-pad weights to lane-dense shapes and cast to bf16 (biases stay f32).

    w1: (9,128)  -> (16,128) bf16   (pad K; zero rows meet the zero-padded x lanes)
    w2: (128,64) -> (128,128) bf16  (pad N; padded cols give 0 after zero-bias + ReLU)
    w3: (64,9)   -> (128,128) bf16  (pad K against zero activations, pad N lane-dense)
    b*: padded to (1,128) f32.
    """
    w1, b1, w2, b2, w3, b3 = params

    w1p = jnp.zeros((16, 128), jnp.bfloat16).at[:9, :].set(w1.astype(jnp.bfloat16))
    b1p = jnp.zeros((1, 128), jnp.float32).at[:, :128].set(b1)

    w2p = jnp.zeros((128, 128), jnp.bfloat16).at[:, :64].set(w2.astype(jnp.bfloat16))
    b2p = jnp.zeros((1, 128), jnp.float32).at[:, :64].set(b2)

    w3p = jnp.zeros((128, 128), jnp.bfloat16).at[:64, :9].set(w3.astype(jnp.bfloat16))
    b3p = jnp.zeros((1, 128), jnp.float32).at[:, :9].set(b3)

    return (w1p, b1p, w2p, b2p, w3p, b3p)


def reference_forward(x, params):
    """Pure-JAX f32 reference matching the PyTorch module."""
    w1, b1, w2, b2, w3, b3 = params
    h1 = jnp.maximum(x @ w1 + b1, 0.0)
    h2 = jnp.maximum(h1 @ w2 + b2, 0.0)
    return h2 @ w3 + b3


if __name__ == "__main__":
    key = jax.random.PRNGKey(0)
    kx, kp = jax.random.split(key)

    B = 8  # small batch of tic-tac-toe boards
    # Board encoded as 9 floats in {-1, 0, +1} (exactly representable in bf16).
    x = jax.random.randint(kx, (B, 9), -1, 2).astype(jnp.float32)

    params = init_params(kp)          # raw f32 (for the reference)
    packed = pack_params(params)      # padded bf16/f32 (for the kernel)

    out = tictactoe_ai_forward(x, packed)
    out = jax.block_until_ready(out)

    ref = reference_forward(x, params)
    assert out.shape == (B, 9)
    # bf16 weights/activations/output with f32 accumulation -> small drift vs f32.
    assert jnp.allclose(out, ref, atol=5e-2, rtol=5e-2), (
        f"max abs diff {jnp.max(jnp.abs(out - ref))}"
    )

    print("KERNEL_OK")
</pallas_src>

<mosaic_0001>
module attributes {stable_mosaic.version = 11 : i64} {
  func.func @mlp_kernel(%arg0: i32, %arg1: memref<16x9xf32, #tpu.memory_space<vmem>>, %arg2: memref<16x128xbf16, #tpu.memory_space<vmem>>, %arg3: memref<1x128xf32, #tpu.memory_space<vmem>>, %arg4: memref<128x128xbf16, #tpu.memory_space<vmem>>, %arg5: memref<1x128xf32, #tpu.memory_space<vmem>>, %arg6: memref<128x128xbf16, #tpu.memory_space<vmem>>, %arg7: memref<1x128xf32, #tpu.memory_space<vmem>>, %arg8: memref<16x128xbf16, #tpu.memory_space<vmem>>, %arg9: memref<16x16xbf16, #tpu.memory_space<vmem>>) attributes {dimension_semantics = [#tpu.dimension_semantics<parallel>], iteration_bounds = array<i64: 1>, scalar_prefetch = 0 : i64, scratch_operands = 1 : i64, tpu.core_type = #tpu.core_type<tc>, window_params = [{transform_indices = @transform_0, window_bounds = array<i64: 16, 9>}, {pipeline_mode = #tpu.pipeline_mode<synchronous>, transform_indices = @transform_1, window_bounds = array<i64: 16, 128>}, {pipeline_mode = #tpu.pipeline_mode<synchronous>, transform_indices = @transform_2, window_bounds = array<i64: 1, 128>}, {pipeline_mode = #tpu.pipeline_mode<synchronous>, transform_indices = @transform_3, window_bounds = array<i64: 128, 128>}, {pipeline_mode = #tpu.pipeline_mode<synchronous>, transform_indices = @transform_4, window_bounds = array<i64: 1, 128>}, {pipeline_mode = #tpu.pipeline_mode<synchronous>, transform_indices = @transform_5, window_bounds = array<i64: 128, 128>}, {pipeline_mode = #tpu.pipeline_mode<synchronous>, transform_indices = @transform_6, window_bounds = array<i64: 1, 128>}, {transform_indices = @transform_7, window_bounds = array<i64: 16, 128>}]} {
    %cst = arith.constant 0.000000e+00 : bf16
    %0 = vector.broadcast %cst : bf16 to vector<16x16xbf16>
    %c0 = arith.constant 0 : index
    %c0_0 = arith.constant 0 : index
    %1 = vector.load %arg9[%c0, %c0_0] : memref<16x16xbf16, #tpu.memory_space<vmem>>, vector<16x16xbf16>
    tpu.vector_store %arg9[%c0, %c0_0], %0 {strides = array<i32>} : memref<16x16xbf16, #tpu.memory_space<vmem>>, vector<16x16xbf16>,
    %c0_1 = arith.constant 0 : index
    %c0_2 = arith.constant 0 : index
    %2 = vector.load %arg1[%c0_1, %c0_2] : memref<16x9xf32, #tpu.memory_space<vmem>>, vector<16x9xf32>
    %3 = arith.truncf %2 : vector<16x9xf32> to vector<16x9xbf16>
    %c0_3 = arith.constant 0 : index
    %c0_4 = arith.constant 0 : index
    %4 = vector.load %arg9[%c0_3, %c0_4] : memref<16x16xbf16, #tpu.memory_space<vmem>>, vector<16x9xbf16>
    tpu.vector_store %arg9[%c0_3, %c0_4], %3 {strides = array<i32>} : memref<16x16xbf16, #tpu.memory_space<vmem>>, vector<16x9xbf16>,
    %c0_5 = arith.constant 0 : index
    %c0_6 = arith.constant 0 : index
    %5 = vector.load %arg9[%c0_5, %c0_6] : memref<16x16xbf16, #tpu.memory_space<vmem>>, vector<16x16xbf16>
    %c0_7 = arith.constant 0 : index
    %c0_8 = arith.constant 0 : index
    %6 = vector.load %arg2[%c0_7, %c0_8] : memref<16x128xbf16, #tpu.memory_space<vmem>>, vector<16x128xbf16>
    %cst_9 = arith.constant dense<0.000000e+00> : vector<16x128xf32>
    %7 = tpu.matmul %5, %6, %cst_9 {dimension_numbers = #tpu.dot_dimension_numbers<[1], [0], [0], [1], [0, 0, 1, 1], [], []>} : vector<16x16xbf16>, vector<16x128xbf16>, vector<16x128xf32> -> vector<16x128xf32>
    %c0_10 = arith.constant 0 : index
    %c0_11 = arith.constant 0 : index
    %8 = vector.load %arg3[%c0_10, %c0_11] : memref<1x128xf32, #tpu.memory_space<vmem>>, vector<1x128xf32>
    %9 = vector.broadcast %8 : vector<1x128xf32> to vector<16x128xf32>
    %10 = arith.addf %7, %9 : vector<16x128xf32>
    %cst_12 = arith.constant 0.000000e+00 : f32
    %11 = vector.broadcast %cst_12 : f32 to vector<16x128xf32>
    %12 = arith.maximumf %10, %11 : vector<16x128xf32>
    %13 = arith.truncf %12 : vector<16x128xf32> to vector<16x128xbf16>
    %c0_13 = arith.constant 0 : index
    %c0_14 = arith.constant 0 : index
    %14 = vector.load %arg4[%c0_13, %c0_14] : memref<128x128xbf16, #tpu.memory_space<vmem>>, vector<128x128xbf16>
    %cst_15 = arith.constant dense<0.000000e+00> : vector<16x128xf32>
    %15 = tpu.matmul %13, %14, %cst_15 {dimension_numbers = #tpu.dot_dimension_numbers<[1], [0], [0], [1], [0, 0, 1, 1], [], []>} : vector<16x128xbf16>, vector<128x128xbf16>, vector<16x128xf32> -> vector<16x128xf32>
    %c0_16 = arith.constant 0 : index
    %c0_17 = arith.constant 0 : index
    %16 = vector.load %arg5[%c0_16, %c0_17] : memref<1x128xf32, #tpu.memory_space<vmem>>, vector<1x128xf32>
    %17 = vector.broadcast %16 : vector<1x128xf32> to vector<16x128xf32>
    %18 = arith.addf %15, %17 : vector<16x128xf32>
    %cst_18 = arith.constant 0.000000e+00 : f32
    %19 = vector.broadcast %cst_18 : f32 to vector<16x128xf32>
    %20 = arith.maximumf %18, %19 : vector<16x128xf32>
    %21 = arith.truncf %20 : vector<16x128xf32> to vector<16x128xbf16>
    %c0_19 = arith.constant 0 : index
    %c0_20 = arith.constant 0 : index
    %22 = vector.load %arg6[%c0_19, %c0_20] : memref<128x128xbf16, #tpu.memory_space<vmem>>, vector<128x128xbf16>
    %cst_21 = arith.constant dense<0.000000e+00> : vector<16x128xf32>
    %23 = tpu.matmul %21, %22, %cst_21 {dimension_numbers = #tpu.dot_dimension_numbers<[1], [0], [0], [1], [0, 0, 1, 1], [], []>} : vector<16x128xbf16>, vector<128x128xbf16>, vector<16x128xf32> -> vector<16x128xf32>
    %c0_22 = arith.constant 0 : index
    %c0_23 = arith.constant 0 : index
    %24 = vector.load %arg7[%c0_22, %c0_23] : memref<1x128xf32, #tpu.memory_space<vmem>>, vector<1x128xf32>
    %25 = vector.broadcast %24 : vector<1x128xf32> to vector<16x128xf32>
    %26 = arith.addf %23, %25 : vector<16x128xf32>
    %27 = arith.truncf %26 : vector<16x128xf32> to vector<16x128xbf16>
    %c0_24 = arith.constant 0 : index
    %c0_25 = arith.constant 0 : index
    %28 = vector.load %arg8[%c0_24, %c0_25] : memref<16x128xbf16, #tpu.memory_space<vmem>>, vector<16x128xbf16>
    tpu.vector_store %arg8[%c0_24, %c0_25], %27 {strides = array<i32>} : memref<16x128xbf16, #tpu.memory_space<vmem>>, vector<16x128xbf16>,
    return
  }
  func.func @transform_0(%arg0: i32) -> (i32, i32) {
    %c0_i32 = arith.constant 0 : i32
    %c0_i32_0 = arith.constant 0 : i32
    return %arg0, %c0_i32 : i32, i32
  }
  func.func @transform_1(%arg0: i32) -> (i32, i32) {
    %c0_i32 = arith.constant 0 : i32
    %c0_i32_0 = arith.constant 0 : i32
    %c0_i32_1 = arith.constant 0 : i32
    return %c0_i32, %c0_i32_0 : i32, i32
  }
  func.func @transform_2(%arg0: i32) -> (i32, i32) {
    %c0_i32 = arith.constant 0 : i32
    %c0_i32_0 = arith.constant 0 : i32
    %c0_i32_1 = arith.constant 0 : i32
    return %c0_i32, %c0_i32_0 : i32, i32
  }
  func.func @transform_3(%arg0: i32) -> (i32, i32) {
    %c0_i32 = arith.constant 0 : i32
    %c0_i32_0 = arith.constant 0 : i32
    %c0_i32_1 = arith.constant 0 : i32
    return %c0_i32, %c0_i32_0 : i32, i32
  }
  func.func @transform_4(%arg0: i32) -> (i32, i32) {
    %c0_i32 = arith.constant 0 : i32
    %c0_i32_0 = arith.constant 0 : i32
    %c0_i32_1 = arith.constant 0 : i32
    return %c0_i32, %c0_i32_0 : i32, i32
  }
  func.func @transform_5(%arg0: i32) -> (i32, i32) {
    %c0_i32 = arith.constant 0 : i32
    %c0_i32_0 = arith.constant 0 : i32
    %c0_i32_1 = arith.constant 0 : i32
    return %c0_i32, %c0_i32_0 : i32, i32
  }
  func.func @transform_6(%arg0: i32) -> (i32, i32) {
    %c0_i32 = arith.constant 0 : i32
    %c0_i32_0 = arith.constant 0 : i32
    %c0_i32_1 = arith.constant 0 : i32
    return %c0_i32, %c0_i32_0 : i32, i32
  }
  func.func @transform_7(%arg0: i32) -> (i32, i32) {
    %c0_i32 = arith.constant 0 : i32
    %c0_i32_0 = arith.constant 0 : i32
    return %arg0, %c0_i32 : i32, i32
  }
}

</mosaic_0001>

<bundles_post_ra>
// kernel: tpu_custom_call.1
= control target key start
LH: loop header
LB: loop body
LE: loop exit
PB: predicated region body
PF: predicated region fallthrough
CT: control target
= control target key end

     0   :  { %12 = vsyncpa [#allocation4], 0  ;;  %s775_s0 = inlined_call_operand.hbm [shape: f32[16,9], index: 0, kind: input, shape index: {}]   ;;  %s776_s1 = inlined_call_operand.hbm [shape: bf16[16,128], index: 1, kind: input, shape index: {}]   ;;  %s777_s2 = inlined_call_operand.vmem [shape: f32[1,128], index: 2, kind: input, shape index: {}]   ;;  %s778_s3 = inlined_call_operand.hbm [shape: bf16[128,128], index: 3, kind: input, shape index: {}]   ;;  %s779_s4 = inlined_call_operand.vmem [shape: f32[1,128], index: 4, kind: input, shape index: {}]   ;;  %s780_s5 = inlined_call_operand.hbm [shape: bf16[128,128], index: 5, kind: input, shape index: {}]   ;;  %s781_s6 = inlined_call_operand.vmem [shape: f32[1,128], index: 6, kind: input, shape index: {}]   ;;  %s782_s7 = inlined_call_operand.hbm [shape: bf16[16,128], index: 7, kind: output, shape index: {}]  }
   0x1   :  { %13 = vsyncpa [#allocation7], 0 }
   0x2   :  { %14 = vsyncpa [#allocation10], 0 }
   0x3   :  { %15 = vsyncpa [#allocation5], 0  ;;  %s664_s24 = smov [#allocation6]  }
   0x4   :  { %s33_s25 = sshll.u32 %s664_s24, 4  ;;  %s34_s25 = int_to_ptr.vmem [resolvable:$true] %s33_s25 }
   0x5   :  { %s564_s26 = scalar_lea.vmem %s34_s25, 128  ;;  %p569_p1 = scmp.lt.s32.totalorder %s34_s25, %s34_s25 }
   0x6   :  { %p565_p0 = scmp.ne.s32.totalorder %s34_s25, %s564_s26  ;;  %p570_p2 = scmp.lt.s32.totalorder %s564_s26, %s564_s26 }
   0x8   :  { %p571_p3 = por %p570_p2, %p569_p1 }
   0xa   :  { %p572_p4 = pnand %p571_p3, %p565_p0 }
   0xc   :  { %575 = shalt.err (!%p572_p4)
}
   0xd   :  { %s665_s27 = smov 64   ;;  %s666_s28 = smov 4  }
   0xe   :  { %39 = dma.hbm_to_vmem [thread:$0]  %s776_s1, 128, %s34_s25, [#allocation7], %s665_s27, %s665_s27, %s666_s28  }
   0xf   :  { %s667_s8 = smov [#allocation3]  }
  0x10   :  { %s21_s9 = sshll.u32 %s667_s8, 4  ;;  %s22_s9 = int_to_ptr.vmem [resolvable:$true] %s21_s9 }
  0x11   :  { %s584_s10 = scalar_lea.vmem %s22_s9, 256  ;;  %p589_p6 = scmp.lt.s32.totalorder %s22_s9, %s22_s9 }
  0x12   :  { %p585_p5 = scmp.ne.s32.totalorder %s22_s9, %s584_s10  ;;  %p590_p7 = scmp.lt.s32.totalorder %s584_s10, %s584_s10 }
  0x14   :  { %p591_p8 = por %p590_p7, %p589_p6 }
  0x16   :  { %p592_p9 = pnand %p591_p8, %p585_p5 }
  0x18   :  { %595 = shalt.err (!%p592_p9)
}
  0x19   :  { %s668_s11 = smov 128   ;;  %s669_s12 = smov 8  }
  0x1a   :  { %27 = dma.hbm_to_vmem [thread:$0]  %s775_s0, 256, %s22_s9, [#allocation4], %s668_s11, %s668_s11, %s669_s12  }
  0x1b   :  { %s670_s15 = smov [#allocation8]   ;;  %s671_s17 = smov [#allocation9]  }
  0x1c   :  { %s47_s16 = sshll.u32 %s670_s15, 4  ;;  %s61_s1 = sshll.u32 %s671_s17, 4  ;;  %s48_s16 = int_to_ptr.vmem [resolvable:$true] %s47_s16  ;;  %s62_s1 = int_to_ptr.vmem [resolvable:$true] %s61_s1 }
  0x1d   :  { %s604_s18 = scalar_lea.vmem %s48_s16, 1024  ;;  %p609_p11 = scmp.lt.s32.totalorder %s48_s16, %s48_s16 }
  0x1e   :  { %p605_p10 = scmp.ne.s32.totalorder %s48_s16, %s604_s18  ;;  %p610_p12 = scmp.lt.s32.totalorder %s604_s18, %s604_s18 }
  0x20   :  { %p611_p13 = por %p610_p12, %p609_p11 }
  0x22   :  { %p612_p0 = pnand %p611_p13, %p605_p10 }
  0x24   :  { %615 = shalt.err (!%p612_p0)
}
  0x25   :  { %53 = dma.hbm_to_vmem [thread:$0]  %s778_s3, 1024, %s48_s16, [#allocation7], %s665_s27, %s665_s27, %s666_s28  }
  0x26   :  { %s624_s0 = scalar_lea.vmem %s62_s1, 1024  ;;  %p629_p2 = scmp.lt.s32.totalorder %s62_s1, %s62_s1 }
  0x27   :  { %p625_p1 = scmp.ne.s32.totalorder %s62_s1, %s624_s0  ;;  %p630_p3 = scmp.lt.s32.totalorder %s624_s0, %s624_s0 }
  0x29   :  { %p631_p4 = por %p630_p3, %p629_p2 }
  0x2b   :  { %p632_p5 = pnand %p631_p4, %p625_p1 }
  0x2d   :  { %635 = shalt.err (!%p632_p5)
}
  0x2e   :  { %67 = dma.hbm_to_vmem [thread:$0]  %s780_s5, 1024, %s62_s1, [#allocation10], %s665_s27, %s665_s27, %s666_s28  }
  0x2f   :  { %656 = dma.done.wait [#allocation4], 256  }
  0x30   :  { %657 = vsyncadd [#allocation4], 4294967040 }
  0x31   :  { %658 = dma.done.wait [#allocation7], 1152  }
  0x32   :  { %659 = vsyncadd [#allocation7], 4294966144 }
  0x33   :  { %660 = dma.done.wait [#allocation10], 1024  }
  0x34   :  { %661 = vsyncadd [#allocation10], 4294966272  ;;  %vm83_vm0 = vcmask 125952   ;;  %v672_v0 = vmov 0.0   ;;  %vm673_vm1 = vmmov 0   ;;  %v674_v1 = vmov 0  }
  0x35   :  { %480 = vmatprep.subr.bf16.mxu0 %v672_v0  ;;  %482 = vmatprep.mubr.msk.bf16.mxu0 %vm673_vm1, %v672_v0  ;;  %84 = vst.msk [vmem:[#allocation2] sm:$0xf] %vm83_vm0, %v674_v1  ;;  %85 = vst.msk [vmem:[#allocation2 + $0x4] sm:$0xf] %vm83_vm0, %v674_v1  ;;  %v538_v2 = vld [vmem:[#allocation6] sm:$0xff]   ;;  %v86_v3 = vld [vmem:[#allocation3] sm:$0xff] }
  0x36   :  { %486 = vmatprep.subr.bf16.mxu1 %v672_v0  ;;  %502 = vmatprep.mubr.msk.bf16.mxu1 %vm673_vm1, %v672_v0  ;;  %v87_v4 = vld [vmem:[#allocation3 + $0x8] sm:$0xff]  ;;  %vm96_vm2 = vcmask 68608   ;;  %v451_v5 = vpack.c.bf16 %v86_v3, %v86_v3  ;;  %v540_v7 = vld [vmem:[#allocation8 + $0x38] sm:$0xff]   ;;  %vm121_vm3 = vcmask 130048   ;;  %v542_v9 = vld [vmem:[#allocation8 + $0x28] sm:$0xff]   ;;  %s675_s26 = smov [#allocation11]  }
  0x37   :  { %481 = vmatpush3.bf16.msra.mxu0 %v538_v2  ;;  %v452_v6 = vpack.c.bf16 %v87_v4, %v87_v4  ;;  %487 = vmatpush3.bf16.msra.mxu1 %v540_v7  ;;  %v541_v8 = vld [vmem:[#allocation8 + $0x30] sm:$0xff]   ;;  %v543_v10 = vld [vmem:[#allocation8 + $0x20] sm:$0xff]   ;;  %v544_v12 = vld [vmem:[#allocation8 + $0x18] sm:$0xff]   ;;  %s411_s29 = sshll.u32 %s675_s26, 4  ;;  %s412_s29 = int_to_ptr.vmem [resolvable:$true] %s411_s29 }
  0x38   :  { %506 = vmatprep.subr.bf16.mxu0 %v672_v0  ;;  %97 = vst.msk [vmem:[#allocation2] sm:$0xf] %vm96_vm2, %v451_v5  ;;  %488 = vmatprep.subr.bf16.mxu1 %v672_v0  ;;  %v545_v13 = vld [vmem:[#allocation8 + $0x10] sm:$0xff]   ;;  %v546_v14 = vld [vmem:[#allocation8 + $0x8] sm:$0xff]   ;;  %v547_v15 = vld [vmem:[#allocation8] sm:$0xff]   ;;  %p641_p7 = scmp.lt.s32.totalorder %s412_s29, %s412_s29 }
  0x39   :  { %98 = vst.msk [vmem:[#allocation2 + $0x4] sm:$0xf] %vm96_vm2, %v452_v6  ;;  %v548_v16 = vld [vmem:[#allocation9 + $0x38] sm:$0xff]   ;;  %v549_v17 = vld [vmem:[#allocation9 + $0x30] sm:$0xff]   ;;  %v550_v18 = vld [vmem:[#allocation9 + $0x28] sm:$0xff]  }
  0x3a   :  { %v551_v19 = vld [vmem:[#allocation9 + $0x20] sm:$0xff]   ;;  %v552_v20 = vld [vmem:[#allocation9 + $0x18] sm:$0xff]   ;;  %v553_v31 = vld [vmem:[#allocation9 + $0x10] sm:$0xff]  }
  0x3b   :  { %489 = vmatpush3.bf16.msra.mxu1 %v541_v8  ;;  %v427_v21 = vld [vmem:[%s777_s2] ss:$0 sm:$0xff]  ;;  %v554_v32 = vld [vmem:[#allocation9 + $0x8] sm:$0xff]  }
  0x3c   :  { %490 = vmatprep.subr.bf16.mxu1 %v672_v0  ;;  %v555_v33 = vld [vmem:[#allocation9] sm:$0xff]  }
  0x3d   :  { %v431_v34 = vld [vmem:[%s779_s4] ss:$0 sm:$0xff]  ;;  %s636_s4 = scalar_lea.vmem %s412_s29, 128 }
  0x3e   :  { %v440_v45 = vld [vmem:[%s781_s6] ss:$0 sm:$0xff]  ;;  %p637_p6 = scmp.ne.s32.totalorder %s412_s29, %s636_s4  ;;  %p642_p8 = scmp.lt.s32.totalorder %s636_s4, %s636_s4 }
  0x3f   :  { %491 = vmatpush3.bf16.msra.mxu1 %v542_v9 }
  0x40   :  { %v539_v11 = vld [vmem:[#allocation2] sm:$0xff]   ;;  %492 = vmatprep.subr.bf16.mxu1 %v672_v0  ;;  %p643_p9 = por %p642_p8, %p641_p7 }
  0x41   :  { %483 = vmatmul.mubr.msk.bf16.vlgmr.msra.gmra.mxu0 %vm121_vm3, %v539_v11 }
  0x42   :  { %522 = vmatprep.mubr.msk.bf16.mxu0 %vm673_vm1, %v672_v0  ;;  %507 = vmatpush3.bf16.msra.mxu0 %v548_v16  ;;  %p644_p10 = pnand %p643_p9, %p637_p6 }
  0x43   :  { %493 = vmatpush3.bf16.msra.mxu1 %v543_v10  ;;  %508 = vmatprep.subr.bf16.mxu0 %v672_v0 }
  0x44   :  { %494 = vmatprep.subr.bf16.mxu1 %v672_v0 }
  0x46   :  { %509 = vmatpush3.bf16.msra.mxu0 %v549_v17 }
  0x47   :  { %495 = vmatpush3.bf16.msra.mxu1 %v544_v12  ;;  %510 = vmatprep.subr.bf16.mxu0 %v672_v0 }
  0x48   :  { %496 = vmatprep.subr.bf16.mxu1 %v672_v0 }
  0x4a   :  { %511 = vmatpush3.bf16.msra.mxu0 %v550_v18 }
  0x4b   :  { %497 = vmatpush3.bf16.msra.mxu1 %v545_v13  ;;  %512 = vmatprep.subr.bf16.mxu0 %v672_v0 }
  0x4c   :  { %498 = vmatprep.subr.bf16.mxu1 %v672_v0 }
  0x4e   :  { %513 = vmatpush3.bf16.msra.mxu0 %v551_v19 }
  0x4f   :  { %499 = vmatpush3.bf16.msra.mxu1 %v546_v14  ;;  %514 = vmatprep.subr.bf16.mxu0 %v672_v0 }
  0x50   :  { %500 = vmatprep.subr.bf16.mxu1 %v672_v0 }
  0x52   :  { %515 = vmatpush3.bf16.msra.mxu0 %v552_v20 }
  0x53   :  { %501 = vmatpush3.bf16.msra.mxu1 %v547_v15  ;;  %516 = vmatprep.subr.bf16.mxu0 %v672_v0 }
  0x56   :  { %517 = vmatpush3.bf16.msra.mxu0 %v553_v31 }
  0x57   :  { %518 = vmatprep.subr.bf16.mxu0 %v672_v0 }
  0x5a   :  { %519 = vmatpush3.bf16.msra.mxu0 %v554_v32 }
  0x5b   :  { %520 = vmatprep.subr.bf16.mxu0 %v672_v0 }
  0x5e   :  { %521 = vmatpush3.bf16.msra.mxu0 %v555_v33 }
 0x101   :  { %v159_v22 = vpop.f32.mrf.mxu0 }
 0x102   :  { %v160_v24 = vadd.f32 %v427_v21, %v159_v22 }
 0x103   :  { %v484_v23 = vpop.f32.mrf.mxu0 }
 0x104   :  { %v166_v28 = vmax.f32 %v160_v24, 0.0 }
 0x105   :  { %v162_v25 = vpop.f32.mrf.mxu0 }
 0x106   :  { %v163_v26 = vadd.f32 %v427_v21, %v162_v25 }
 0x107   :  { %v485_v27 = vpop.f32.mrf.mxu0 }
 0x108   :  { %v167_v29 = vmax.f32 %v163_v26, 0.0 }
 0x10a   :  { %v168_v30 = vpack.c.bf16 %v167_v29, %v166_v28 }
 0x10c   :  { %503 = vmatmul.mubr.bf16.vlgmr.msra.gmra.mxu1 %v168_v30 }
 0x1cc   :  { %v274_v35 = vpop.f32.mrf.mxu1 }
 0x1cd   :  { %v275_v37 = vadd.f32 %v431_v34, %v274_v35 }
 0x1ce   :  { %v504_v36 = vpop.f32.mrf.mxu1 }
 0x1cf   :  { %v281_v41 = vmax.f32 %v275_v37, 0.0 }
 0x1d0   :  { %v277_v38 = vpop.f32.mrf.mxu1 }
 0x1d1   :  { %v278_v39 = vadd.f32 %v431_v34, %v277_v38 }
 0x1d2   :  { %v505_v40 = vpop.f32.mrf.mxu1 }
 0x1d3   :  { %v282_v42 = vmax.f32 %v278_v39, 0.0 }
 0x1d5   :  { %v283_v43 = vpack.c.bf16 %v282_v42, %v281_v41 }
 0x1d7   :  { %523 = vmatmul.mubr.bf16.vlgmr.msra.gmra.mxu0 %v283_v43 }
 0x297   :  { %v389_v44 = vpop.f32.mrf.mxu0 }
 0x298   :  { %v390_v48 = vadd.f32 %v440_v45, %v389_v44 }
 0x299   :  { %v524_v46 = vpop.f32.mrf.mxu0 }
 0x29b   :  { %v392_v47 = vpop.f32.mrf.mxu0 }
 0x29c   :  { %v393_v49 = vadd.f32 %v440_v45, %v392_v47 }
 0x29d   :  { %v525_v50 = vpop.f32.mrf.mxu0 }
 0x29e   :  { %v458_v51 = vpack.c.bf16 %v393_v49, %v390_v48 }
 0x2a0   :  { %459 = vst [vmem:[#allocation11] sm:$0xff] %v458_v51  }
 0x2a1   :  { %647 = shalt.err (!%p644_p10)
}
 0x2a2   :  { %417 = dma.vmem_to_hbm [thread:$0]  %s412_s29, 128, %s782_s7, [#allocation5], %s665_s27, %s665_s27, %s666_s28  }
 0x2a3   :  { %662 = dma.done.wait [#allocation5], 128  }
 0x2a4   :  { %663 = vsyncadd [#allocation5], 4294967168 }
 0x2a5   :  { %421 = vsyncpa [#allocation4], 1 }
 0x2a6   :  { %422 = vsyncpa [#allocation7], 1 }
 0x2a7   :  { %423 = vsyncpa [#allocation10], 1 }
 0x2a8   :  { %424 = vsyncpa [#allocation5], 1 }

</bundles_post_ra>
